<compile_context>
chip_gen: v7x
topology: tpu7x:2x2x1
jax: 0.10.0
libtpu: 0.0.40
codegen_flags: <defaults>
</compile_context>

<pallas_src>
import math

import jax
import jax.numpy as jnp
from jax.experimental import pallas as pl
from jax.experimental.pallas import tpu as pltpu


def _autoencoder_kernel(
    x_ref,                                   # (TILE_B, D) bf16
    ew1, eb1, ew2, eb2, ew3, eb3,            # encoder params (weights bf16, biases f32)
    wf, bf, dw2, db2, dw3, db3,              # fused dec1 + remaining decoder params
    decoded_ref, latents_ref,                # (TILE_B, D) f32, (TILE_B, L) f32
):
    x = x_ref[...]

    # ---- encoder ----
    h = jnp.dot(x, ew1[...], preferred_element_type=jnp.float32) + eb1[...]
    h = jnp.maximum(h, 0.0).astype(jnp.bfloat16)
    h = jnp.dot(h, ew2[...], preferred_element_type=jnp.float32) + eb2[...]
    h = jnp.maximum(h, 0.0).astype(jnp.bfloat16)

    # latents and the (fused) first decoder layer both read the same hidden
    # state h -> independent MXU passes, no serial latents->g dependency.
    latents = jnp.dot(h, ew3[...], preferred_element_type=jnp.float32) + eb3[...]
    g = jnp.dot(h, wf[...], preferred_element_type=jnp.float32) + bf[...]

    # ---- rest of decoder ----
    g = jnp.maximum(g, 0.0).astype(jnp.bfloat16)
    g = jnp.dot(g, dw2[...], preferred_element_type=jnp.float32) + db2[...]
    g = jnp.maximum(g, 0.0).astype(jnp.bfloat16)
    decoded = jnp.dot(g, dw3[...], preferred_element_type=jnp.float32) + db3[...]

    latents_ref[...] = latents.astype(latents_ref.dtype)
    decoded_ref[...] = decoded.astype(decoded_ref.dtype)


def _round_up(n, m):
    return ((n + m - 1) // m) * m


def autoencoder_forward(x, params, *, tile_b=512):
    """Run the autoencoder forward pass. Returns (decoded, latents)."""
    B, D = x.shape
    enc = params["enc"]
    dec = params["dec"]
    L = enc[-1][0].shape[1]

    (ew1, eb1), (ew2, eb2), (ew3, eb3) = enc
    (dw1, db1), (dw2, db2), (dw3, db3) = dec

    # Fuse enc3 @ dec1 (no ReLU between them); numerics unchanged up to f32/bf16
    # rounding.
    w_fused = ew3 @ dw1                  # (32, 32)
    b_fused = eb3 @ dw1 + db1            # (1, 32)

    def w16(w):
        return w.astype(jnp.bfloat16)

    flat_params = [
        w16(ew1), eb1, w16(ew2), eb2, w16(ew3), eb3,
        w16(w_fused), b_fused, w16(dw2), db2, w16(dw3), db3,
    ]

    # Batch tiling: tile must be a multiple of 16 (bf16 sublane packing); pad B
    # up to a tile multiple and slice the padded rows off the outputs.
    tb = max(16, min(tile_b, _round_up(B, 16)))
    tb = _round_up(tb, 16)
    B_pad = _round_up(B, tb)

    x_p = x.astype(jnp.bfloat16)
    if B_pad != B:
        x_p = jnp.pad(x_p, ((0, B_pad - B), (0, 0)))

    grid = (B_pad // tb,)

    def full_spec(a):
        nd = a.ndim
        return pl.BlockSpec(tuple(a.shape), lambda i, _nd=nd: (0,) * _nd)

    in_specs = [pl.BlockSpec((tb, D), lambda i: (i, 0))] + [
        full_spec(a) for a in flat_params
    ]
    out_specs = (
        pl.BlockSpec((tb, D), lambda i: (i, 0)),
        pl.BlockSpec((tb, L), lambda i: (i, 0)),
    )

    hidden = [w.shape[1] for (w, _) in enc[:-1]]         # e.g. [64, 32]
    h0, h1 = hidden[0], hidden[1]
    flops = 2 * B_pad * (D * h0 + h0 * h1 + h1 * L + h1 * h1 + h1 * h0 + h0 * D)
    param_bytes = sum(int(a.size) * a.dtype.itemsize for a in flat_params)
    bytes_accessed = int(x_p.size) * 2 + B_pad * (D + L) * 4 + param_bytes
    cost = pl.CostEstimate(
        flops=int(flops), transcendentals=0, bytes_accessed=int(bytes_accessed)
    )

    decoded, latents = pl.pallas_call(
        _autoencoder_kernel,
        out_shape=(
            jax.ShapeDtypeStruct((B_pad, D), jnp.float32),
            jax.ShapeDtypeStruct((B_pad, L), jnp.float32),
        ),
        grid=grid,
        in_specs=in_specs,
        out_specs=out_specs,
        compiler_params=pltpu.CompilerParams(
            dimension_semantics=("parallel",),
            vmem_limit_bytes=32 * 1024 * 1024,
        ),
        cost_estimate=cost,
    )(x_p, *flat_params)

    if B_pad != B:
        decoded = decoded[:B]
        latents = latents[:B]
    return decoded, latents


def init_params(key, input_dim, latent_dim, k, layer_sizes=(64, 32)):
    """Deterministic init mirroring nn.Linear default (uniform(-1/sqrt(fan_in), ...)).
    Weights are stored transposed as (in, out) so the kernel computes x @ W + b."""
    sizes = [input_dim] + list(layer_sizes) + [latent_dim]

    def linear(key, fan_in, fan_out):
        kw, kb = jax.random.split(key)
        bound = 1.0 / math.sqrt(fan_in)
        w = jax.random.uniform(kw, (fan_in, fan_out), jnp.float32, -bound, bound)
        b = jax.random.uniform(kb, (1, fan_out), jnp.float32, -bound, bound)
        return w, b

    n_layers = len(sizes) - 1
    keys = jax.random.split(key, 2 * n_layers + 1)

    enc = []
    dec = []
    for i in range(n_layers):
        enc.append(linear(keys[i], sizes[i], sizes[i + 1]))
        dec.append(linear(keys[n_layers + i], sizes[-(i + 1)], sizes[-(i + 2)]))

    # cluster_centers is a parameter of the module but is not used in forward().
    cluster_centers = jax.random.uniform(keys[-1], (k, latent_dim), jnp.float32)
    return {"enc": enc, "dec": dec, "cluster_centers": cluster_centers}


def _reference_forward(x, params):
    """Pure-JAX f32 reference (same math, unfused) for correctness checks."""
    h = x
    for i, (w, b) in enumerate(params["enc"]):
        h = h @ w + b
        if i != len(params["enc"]) - 1:
            h = jnp.maximum(h, 0.0)
    latents = h
    g = latents
    for i, (w, b) in enumerate(params["dec"]):
        g = g @ w + b
        if i != len(params["dec"]) - 1:
            g = jnp.maximum(g, 0.0)
    return g, latents


if __name__ == "__main__":
    key = jax.random.PRNGKey(0)
    k_x, k_p = jax.random.split(key)

    B = 40           # deliberately NOT a tile multiple -> exercises padding + 3-step grid
    INPUT_DIM = 32
    LATENT_DIM = 8
    K = 4            # number of cluster centers (unused in forward)

    x = jax.random.normal(k_x, (B, INPUT_DIM), jnp.float32)
    params = init_params(k_p, INPUT_DIM, LATENT_DIM, K)

    # Small tile for the test so the batch grid (and megacore sharding) is
    # exercised; production use would keep the default tile_b=512.
    decoded, latents = autoencoder_forward(x, params, tile_b=16)
    decoded = jax.block_until_ready(decoded)
    latents = jax.block_until_ready(latents)

    # sanity check against pure-JAX f32 reference (bf16 MXU operands -> relaxed tol)
    ref_decoded, ref_latents = _reference_forward(x, params)
    assert decoded.shape == (B, INPUT_DIM)
    assert latents.shape == (B, LATENT_DIM)
    assert jnp.allclose(decoded, ref_decoded, atol=5e-2, rtol=5e-2), (
        float(jnp.max(jnp.abs(decoded - ref_decoded))))
    assert jnp.allclose(latents, ref_latents, atol=5e-2, rtol=5e-2), (
        float(jnp.max(jnp.abs(latents - ref_latents))))

    print("KERNEL_OK")
</pallas_src>

<mosaic_0001>
module attributes {stable_mosaic.version = 11 : i64} {
  func.func @_autoencoder_kernel(%arg0: i32, %arg1: memref<16x32xbf16, #tpu.memory_space<vmem>>, %arg2: memref<32x64xbf16, #tpu.memory_space<vmem>>, %arg3: memref<1x64xf32, #tpu.memory_space<vmem>>, %arg4: memref<64x32xbf16, #tpu.memory_space<vmem>>, %arg5: memref<1x32xf32, #tpu.memory_space<vmem>>, %arg6: memref<32x8xbf16, #tpu.memory_space<vmem>>, %arg7: memref<1x8xf32, #tpu.memory_space<vmem>>, %arg8: memref<32x32xbf16, #tpu.memory_space<vmem>>, %arg9: memref<1x32xf32, #tpu.memory_space<vmem>>, %arg10: memref<32x64xbf16, #tpu.memory_space<vmem>>, %arg11: memref<1x64xf32, #tpu.memory_space<vmem>>, %arg12: memref<64x32xbf16, #tpu.memory_space<vmem>>, %arg13: memref<1x32xf32, #tpu.memory_space<vmem>>, %arg14: memref<16x32xf32, #tpu.memory_space<vmem>>, %arg15: memref<16x8xf32, #tpu.memory_space<vmem>>) attributes {dimension_semantics = [#tpu.dimension_semantics<parallel>], iteration_bounds = array<i64: 3>, scalar_prefetch = 0 : i64, scratch_operands = 0 : i64, tpu.core_type = #tpu.core_type<tc>, window_params = [{transform_indices = @transform_0, window_bounds = array<i64: 16, 32>}, {pipeline_mode = #tpu.pipeline_mode<synchronous>, transform_indices = @transform_1, window_bounds = array<i64: 32, 64>}, {pipeline_mode = #tpu.pipeline_mode<synchronous>, transform_indices = @transform_2, window_bounds = array<i64: 1, 64>}, {pipeline_mode = #tpu.pipeline_mode<synchronous>, transform_indices = @transform_3, window_bounds = array<i64: 64, 32>}, {pipeline_mode = #tpu.pipeline_mode<synchronous>, transform_indices = @transform_4, window_bounds = array<i64: 1, 32>}, {pipeline_mode = #tpu.pipeline_mode<synchronous>, transform_indices = @transform_5, window_bounds = array<i64: 32, 8>}, {pipeline_mode = #tpu.pipeline_mode<synchronous>, transform_indices = @transform_6, window_bounds = array<i64: 1, 8>}, {pipeline_mode = #tpu.pipeline_mode<synchronous>, transform_indices = @transform_7, window_bounds = array<i64: 32, 32>}, {pipeline_mode = #tpu.pipeline_mode<synchronous>, transform_indices = @transform_8, window_bounds = array<i64: 1, 32>}, {pipeline_mode = #tpu.pipeline_mode<synchronous>, transform_indices = @transform_9, window_bounds = array<i64: 32, 64>}, {pipeline_mode = #tpu.pipeline_mode<synchronous>, transform_indices = @transform_10, window_bounds = array<i64: 1, 64>}, {pipeline_mode = #tpu.pipeline_mode<synchronous>, transform_indices = @transform_11, window_bounds = array<i64: 64, 32>}, {pipeline_mode = #tpu.pipeline_mode<synchronous>, transform_indices = @transform_12, window_bounds = array<i64: 1, 32>}, {transform_indices = @transform_13, window_bounds = array<i64: 16, 32>}, {transform_indices = @transform_14, window_bounds = array<i64: 16, 8>}]} {
    %c0 = arith.constant 0 : index
    %c0_0 = arith.constant 0 : index
    %0 = vector.load %arg1[%c0, %c0_0] : memref<16x32xbf16, #tpu.memory_space<vmem>>, vector<16x32xbf16>
    %c0_1 = arith.constant 0 : index
    %c0_2 = arith.constant 0 : index
    %1 = vector.load %arg2[%c0_1, %c0_2] : memref<32x64xbf16, #tpu.memory_space<vmem>>, vector<32x64xbf16>
    %cst = arith.constant dense<0.000000e+00> : vector<16x64xf32>
    %2 = tpu.matmul %0, %1, %cst {dimension_numbers = #tpu.dot_dimension_numbers<[1], [0], [0], [1], [0, 0, 1, 1], [], []>} : vector<16x32xbf16>, vector<32x64xbf16>, vector<16x64xf32> -> vector<16x64xf32>
    %c0_3 = arith.constant 0 : index
    %c0_4 = arith.constant 0 : index
    %3 = vector.load %arg3[%c0_3, %c0_4] : memref<1x64xf32, #tpu.memory_space<vmem>>, vector<1x64xf32>
    %4 = vector.broadcast %3 : vector<1x64xf32> to vector<16x64xf32>
    %5 = arith.addf %2, %4 : vector<16x64xf32>
    %cst_5 = arith.constant 0.000000e+00 : f32
    %6 = vector.broadcast %cst_5 : f32 to vector<16x64xf32>
    %7 = arith.maximumf %5, %6 : vector<16x64xf32>
    %8 = arith.truncf %7 : vector<16x64xf32> to vector<16x64xbf16>
    %c0_6 = arith.constant 0 : index
    %c0_7 = arith.constant 0 : index
    %9 = vector.load %arg4[%c0_6, %c0_7] : memref<64x32xbf16, #tpu.memory_space<vmem>>, vector<64x32xbf16>
    %cst_8 = arith.constant dense<0.000000e+00> : vector<16x32xf32>
    %10 = tpu.matmul %8, %9, %cst_8 {dimension_numbers = #tpu.dot_dimension_numbers<[1], [0], [0], [1], [0, 0, 1, 1], [], []>} : vector<16x64xbf16>, vector<64x32xbf16>, vector<16x32xf32> -> vector<16x32xf32>
    %c0_9 = arith.constant 0 : index
    %c0_10 = arith.constant 0 : index
    %11 = vector.load %arg5[%c0_9, %c0_10] : memref<1x32xf32, #tpu.memory_space<vmem>>, vector<1x32xf32>
    %12 = vector.broadcast %11 : vector<1x32xf32> to vector<16x32xf32>
    %13 = arith.addf %10, %12 : vector<16x32xf32>
    %cst_11 = arith.constant 0.000000e+00 : f32
    %14 = vector.broadcast %cst_11 : f32 to vector<16x32xf32>
    %15 = arith.maximumf %13, %14 : vector<16x32xf32>
    %16 = arith.truncf %15 : vector<16x32xf32> to vector<16x32xbf16>
    %c0_12 = arith.constant 0 : index
    %c0_13 = arith.constant 0 : index
    %17 = vector.load %arg6[%c0_12, %c0_13] : memref<32x8xbf16, #tpu.memory_space<vmem>>, vector<32x8xbf16>
    %cst_14 = arith.constant dense<0.000000e+00> : vector<16x8xf32>
    %18 = tpu.matmul %16, %17, %cst_14 {dimension_numbers = #tpu.dot_dimension_numbers<[1], [0], [0], [1], [0, 0, 1, 1], [], []>} : vector<16x32xbf16>, vector<32x8xbf16>, vector<16x8xf32> -> vector<16x8xf32>
    %c0_15 = arith.constant 0 : index
    %c0_16 = arith.constant 0 : index
    %19 = vector.load %arg7[%c0_15, %c0_16] : memref<1x8xf32, #tpu.memory_space<vmem>>, vector<1x8xf32>
    %20 = vector.broadcast %19 : vector<1x8xf32> to vector<16x8xf32>
    %21 = arith.addf %18, %20 : vector<16x8xf32>
    %c0_17 = arith.constant 0 : index
    %c0_18 = arith.constant 0 : index
    %22 = vector.load %arg8[%c0_17, %c0_18] : memref<32x32xbf16, #tpu.memory_space<vmem>>, vector<32x32xbf16>
    %cst_19 = arith.constant dense<0.000000e+00> : vector<16x32xf32>
    %23 = tpu.matmul %16, %22, %cst_19 {dimension_numbers = #tpu.dot_dimension_numbers<[1], [0], [0], [1], [0, 0, 1, 1], [], []>} : vector<16x32xbf16>, vector<32x32xbf16>, vector<16x32xf32> -> vector<16x32xf32>
    %c0_20 = arith.constant 0 : index
    %c0_21 = arith.constant 0 : index
    %24 = vector.load %arg9[%c0_20, %c0_21] : memref<1x32xf32, #tpu.memory_space<vmem>>, vector<1x32xf32>
    %25 = vector.broadcast %24 : vector<1x32xf32> to vector<16x32xf32>
    %26 = arith.addf %23, %25 : vector<16x32xf32>
    %cst_22 = arith.constant 0.000000e+00 : f32
    %27 = vector.broadcast %cst_22 : f32 to vector<16x32xf32>
    %28 = arith.maximumf %26, %27 : vector<16x32xf32>
    %29 = arith.truncf %28 : vector<16x32xf32> to vector<16x32xbf16>
    %c0_23 = arith.constant 0 : index
    %c0_24 = arith.constant 0 : index
    %30 = vector.load %arg10[%c0_23, %c0_24] : memref<32x64xbf16, #tpu.memory_space<vmem>>, vector<32x64xbf16>
    %cst_25 = arith.constant dense<0.000000e+00> : vector<16x64xf32>
    %31 = tpu.matmul %29, %30, %cst_25 {dimension_numbers = #tpu.dot_dimension_numbers<[1], [0], [0], [1], [0, 0, 1, 1], [], []>} : vector<16x32xbf16>, vector<32x64xbf16>, vector<16x64xf32> -> vector<16x64xf32>
    %c0_26 = arith.constant 0 : index
    %c0_27 = arith.constant 0 : index
    %32 = vector.load %arg11[%c0_26, %c0_27] : memref<1x64xf32, #tpu.memory_space<vmem>>, vector<1x64xf32>
    %33 = vector.broadcast %32 : vector<1x64xf32> to vector<16x64xf32>
    %34 = arith.addf %31, %33 : vector<16x64xf32>
    %cst_28 = arith.constant 0.000000e+00 : f32
    %35 = vector.broadcast %cst_28 : f32 to vector<16x64xf32>
    %36 = arith.maximumf %34, %35 : vector<16x64xf32>
    %37 = arith.truncf %36 : vector<16x64xf32> to vector<16x64xbf16>
    %c0_29 = arith.constant 0 : index
    %c0_30 = arith.constant 0 : index
    %38 = vector.load %arg12[%c0_29, %c0_30] : memref<64x32xbf16, #tpu.memory_space<vmem>>, vector<64x32xbf16>
    %cst_31 = arith.constant dense<0.000000e+00> : vector<16x32xf32>
    %39 = tpu.matmul %37, %38, %cst_31 {dimension_numbers = #tpu.dot_dimension_numbers<[1], [0], [0], [1], [0, 0, 1, 1], [], []>} : vector<16x64xbf16>, vector<64x32xbf16>, vector<16x32xf32> -> vector<16x32xf32>
    %c0_32 = arith.constant 0 : index
    %c0_33 = arith.constant 0 : index
    %40 = vector.load %arg13[%c0_32, %c0_33] : memref<1x32xf32, #tpu.memory_space<vmem>>, vector<1x32xf32>
    %41 = vector.broadcast %40 : vector<1x32xf32> to vector<16x32xf32>
    %42 = arith.addf %39, %41 : vector<16x32xf32>
    %c0_34 = arith.constant 0 : index
    %c0_35 = arith.constant 0 : index
    %43 = vector.load %arg15[%c0_34, %c0_35] : memref<16x8xf32, #tpu.memory_space<vmem>>, vector<16x8xf32>
    tpu.vector_store %arg15[%c0_34, %c0_35], %21 {strides = array<i32>} : memref<16x8xf32, #tpu.memory_space<vmem>>, vector<16x8xf32>,
    %c0_36 = arith.constant 0 : index
    %c0_37 = arith.constant 0 : index
    %44 = vector.load %arg14[%c0_36, %c0_37] : memref<16x32xf32, #tpu.memory_space<vmem>>, vector<16x32xf32>
    tpu.vector_store %arg14[%c0_36, %c0_37], %42 {strides = array<i32>} : memref<16x32xf32, #tpu.memory_space<vmem>>, vector<16x32xf32>,
    return
  }
  func.func @transform_0(%arg0: i32) -> (i32, i32) {
    %c0_i32 = arith.constant 0 : i32
    %c0_i32_0 = arith.constant 0 : i32
    return %arg0, %c0_i32 : i32, i32
  }
  func.func @transform_1(%arg0: i32) -> (i32, i32) {
    %c0_i32 = arith.constant 0 : i32
    %c0_i32_0 = arith.constant 0 : i32
    %c0_i32_1 = arith.constant 0 : i32
    return %c0_i32, %c0_i32_0 : i32, i32
  }
  func.func @transform_2(%arg0: i32) -> (i32, i32) {
    %c0_i32 = arith.constant 0 : i32
    %c0_i32_0 = arith.constant 0 : i32
    %c0_i32_1 = arith.constant 0 : i32
    return %c0_i32, %c0_i32_0 : i32, i32
  }
  func.func @transform_3(%arg0: i32) -> (i32, i32) {
    %c0_i32 = arith.constant 0 : i32
    %c0_i32_0 = arith.constant 0 : i32
    %c0_i32_1 = arith.constant 0 : i32
    return %c0_i32, %c0_i32_0 : i32, i32
  }
  func.func @transform_4(%arg0: i32) -> (i32, i32) {
    %c0_i32 = arith.constant 0 : i32
    %c0_i32_0 = arith.constant 0 : i32
    %c0_i32_1 = arith.constant 0 : i32
    return %c0_i32, %c0_i32_0 : i32, i32
  }
  func.func @transform_5(%arg0: i32) -> (i32, i32) {
    %c0_i32 = arith.constant 0 : i32
    %c0_i32_0 = arith.constant 0 : i32
    %c0_i32_1 = arith.constant 0 : i32
    return %c0_i32, %c0_i32_0 : i32, i32
  }
  func.func @transform_6(%arg0: i32) -> (i32, i32) {
    %c0_i32 = arith.constant 0 : i32
    %c0_i32_0 = arith.constant 0 : i32
    %c0_i32_1 = arith.constant 0 : i32
    return %c0_i32, %c0_i32_0 : i32, i32
  }
  func.func @transform_7(%arg0: i32) -> (i32, i32) {
    %c0_i32 = arith.constant 0 : i32
    %c0_i32_0 = arith.constant 0 : i32
    %c0_i32_1 = arith.constant 0 : i32
    return %c0_i32, %c0_i32_0 : i32, i32
  }
  func.func @transform_8(%arg0: i32) -> (i32, i32) {
    %c0_i32 = arith.constant 0 : i32
    %c0_i32_0 = arith.constant 0 : i32
    %c0_i32_1 = arith.constant 0 : i32
    return %c0_i32, %c0_i32_0 : i32, i32
  }
  func.func @transform_9(%arg0: i32) -> (i32, i32) {
    %c0_i32 = arith.constant 0 : i32
    %c0_i32_0 = arith.constant 0 : i32
    %c0_i32_1 = arith.constant 0 : i32
    return %c0_i32, %c0_i32_0 : i32, i32
  }
  func.func @transform_10(%arg0: i32) -> (i32, i32) {
    %c0_i32 = arith.constant 0 : i32
    %c0_i32_0 = arith.constant 0 : i32
    %c0_i32_1 = arith.constant 0 : i32
    return %c0_i32, %c0_i32_0 : i32, i32
  }
  func.func @transform_11(%arg0: i32) -> (i32, i32) {
    %c0_i32 = arith.constant 0 : i32
    %c0_i32_0 = arith.constant 0 : i32
    %c0_i32_1 = arith.constant 0 : i32
    return %c0_i32, %c0_i32_0 : i32, i32
  }
  func.func @transform_12(%arg0: i32) -> (i32, i32) {
    %c0_i32 = arith.constant 0 : i32
    %c0_i32_0 = arith.constant 0 : i32
    %c0_i32_1 = arith.constant 0 : i32
    return %c0_i32, %c0_i32_0 : i32, i32
  }
  func.func @transform_13(%arg0: i32) -> (i32, i32) {
    %c0_i32 = arith.constant 0 : i32
    %c0_i32_0 = arith.constant 0 : i32
    return %arg0, %c0_i32 : i32, i32
  }
  func.func @transform_14(%arg0: i32) -> (i32, i32) {
    %c0_i32 = arith.constant 0 : i32
    %c0_i32_0 = arith.constant 0 : i32
    return %arg0, %c0_i32 : i32, i32
  }
}

</mosaic_0001>

<bundles_post_ra>
// kernel: tpu_custom_call.1
= control target key start
LH: loop header
LB: loop body
LE: loop exit
PB: predicated region body
PF: predicated region fallthrough
CT: control target
= control target key end

     0   :  { %s1265_s29 = smov 0   ;;  %s1395_s0 = inlined_call_operand.vmem [shape: bf16[48,32], index: 0, kind: input, shape index: {}]   ;;  %s1396_s1 = inlined_call_operand.vmem [shape: bf16[32,64], index: 1, kind: input, shape index: {}]   ;;  %s1397_s2 = inlined_call_operand.vmem [shape: f32[1,64], index: 2, kind: input, shape index: {}]   ;;  %s1398_s3 = inlined_call_operand.vmem [shape: bf16[64,32], index: 3, kind: input, shape index: {}]   ;;  %s1399_s4 = inlined_call_operand.vmem [shape: f32[1,32], index: 4, kind: input, shape index: {}]   ;;  %s1400_s5 = inlined_call_operand.vmem [shape: bf16[32,8], index: 5, kind: input, shape index: {}]   ;;  %s1401_s6 = inlined_call_operand.vmem [shape: f32[1,8], index: 6, kind: input, shape index: {}]   ;;  %s1402_s7 = inlined_call_operand.vmem [shape: bf16[32,32], index: 7, kind: input, shape index: {}]   ;;  %s1403_s8 = inlined_call_operand.vmem [shape: f32[1,32], index: 8, kind: input, shape index: {}]   ;;  %s1404_s9 = inlined_call_operand.vmem [shape: bf16[32,64], index: 9, kind: input, shape index: {}]   ;;  %s1405_s10 = inlined_call_operand.vmem [shape: f32[1,64], index: 10, kind: input, shape index: {}]   ;;  %s1406_s11 = inlined_call_operand.vmem [shape: bf16[64,32], index: 11, kind: input, shape index: {}]   ;;  %s1407_s12 = inlined_call_operand.vmem [shape: f32[1,32], index: 12, kind: input, shape index: {}]   ;;  %s1408_s13 = inlined_call_operand.vmem [shape: f32[48,32], index: 13, kind: output, shape index: {0}]   ;;  %s1409_s14 = inlined_call_operand.vmem [shape: f32[48,8], index: 14, kind: output, shape index: {1}]  }
   0x1 LB: > { %s1033_s30 = sadd.s32 4294967295, %s1186_s29   ;;  %p1037_p0 = scmp.ge.s32.totalorder %s1186_s29, 1  ;;  %s1186_s29 = sphi %s1265_s29, %s25_s29  }
   0x2   : > { %p416_p1 = scmp.lt.s32.totalorder %s1186_s29, 4 }
   0x4   : > { %p417_p2 = pnand %p1037_p0, %p416_p1 }
   0x5   : > { %v1163_v0 = vld [vmem:[%s1396_s1] sm:$0xff] (!%p417_p2)   ;;  %v1188_v1 = vmov (!%p417_p2), 0.0   ;;  %v1164_v2 = vld [vmem:[%s1396_s1 + $0x8] sm:$0xff] (!%p417_p2)   ;;  %vm1189_vm0 = vmmov (!%p417_p2), 0   ;;  %s1038_s19 = sshll.u32 (!%p417_p2), %s1033_s30, 1  ;;  %vm516_vm1 = vcmask (!%p417_p2), 261120  }
   0x6   : > { %420 = sbr.rel (%p417_p2) target bundleno = 1122 (0x462), region = 72  ;;  %1097 = vmatprep.subr.bf16.mxu1 (!%p417_p2), %v1188_v1  ;;  %1117 = vmatprep.subr.bf16.mxu0 (!%p417_p2), %v1188_v1  ;;  %p468_p3 = scmp.lt.s32.totalorder (!%p417_p2), %s1038_s19, 5  ;;  %v1166_v3 = vld [vmem:[%s1398_s3] sm:$0xff] (!%p417_p2)   ;;  %v1167_v5 = vld [vmem:[%s1398_s3 + $0x8] sm:$0xff] (!%p417_p2)   ;;  %v1168_v6 = vld [vmem:[%s1398_s3 + $0x10] sm:$0xff] (!%p417_p2)   ;;  %vm603_vm2 = vcmask (!%p417_p2), 523264  }
   0x7   : > { %1098 = vmatpush3.bf16.msra.mxu1 (!%p417_p2), %v1163_v0  ;;  %1101 = vmatprep.mubr.msk.bf16.mxu1 (!%p417_p2), %vm1189_vm0, %v1188_v1  ;;  %v1169_v7 = vld [vmem:[%s1398_s3 + $0x18] sm:$0xff] (!%p417_p2)   ;;  %v1044_v8 = vld [vmem:[%s1397_s2] ss:$0 sm:$0xff] (!%p417_p2)  ;;  %v1171_v19 = vld [vmem:[%s1400_s5 + $0x8] sm:$0xff] (!%p417_p2)   ;;  %vm938_vm3 = vcmask (!%p417_p2), 64512  }
   0x8   : > { %1099 = vmatprep.subr.bf16.mxu1 (!%p417_p2), %v1188_v1  ;;  %1121 = vmatprep.mubr.msk.bf16.mxu0 (!%p417_p2), %vm1189_vm0, %v1188_v1  ;;  %v1170_v18 = vld [vmem:[%s1400_s5] sm:$0xff] (!%p417_p2)   ;;  %v1173_v31 = vld [vmem:[%s1402_s7 + $0x8] sm:$0xff] (!%p417_p2)   ;;  %v1178_v53 = vld [vmem:[%s1406_s11 + $0x10] sm:$0xff] (!%p417_p2)  }
   0x9   : > { %1118 = vmatpush3.bf16.msra.mxu0 (!%p417_p2), %v1170_v18  ;;  %v1049_v20 = vld [vmem:[%s1399_s4] ss:$0 sm:$0xff] (!%p417_p2)  ;;  %v1175_v33 = vld [vmem:[%s1404_s9 + $0x8] sm:$0xff] (!%p417_p2)   ;;  %v1179_v54 = vld [vmem:[%s1406_s11 + $0x18] sm:$0xff] (!%p417_p2)  }
   0xa   : > { %1119 = vmatprep.subr.bf16.mxu0 (!%p417_p2), %v1188_v1  ;;  %v1172_v29 = vld [vmem:[%s1402_s7] sm:$0xff] (!%p417_p2)   ;;  %v1177_v35 = vld [vmem:[%s1406_s11 + $0x8] sm:$0xff] (!%p417_p2)  }
   0xb   : > { %1100 = vmatpush3.bf16.msra.mxu1 (!%p417_p2), %v1164_v2  ;;  %v1174_v32 = vld [vmem:[%s1404_s9] sm:$0xff] (!%p417_p2)  }
   0xc   : > { %1105 = vmatprep.subr.bf16.mxu1 (!%p417_p2), %v1188_v1  ;;  %v1176_v34 = vld [vmem:[%s1406_s11] sm:$0xff] (!%p417_p2)  }
   0xd   : > { %s1411_s19 = smov (!%p468_p3, %s1038_s19), 5  ;;  %1120 = vmatpush3.bf16.msra.mxu0 %v1171_v19  ;;  %v1055_v36 = vld [vmem:[%s1401_s6] ss:$0 sm:$0xff] }
   0xe   : > { %s1039_s20 = sshll.u32 %s1411_s19, 2  ;;  %1125 = vmatprep.subr.bf16.mxu0 %v1188_v1  ;;  %s1041_s24 = sshll.u32 %s1411_s19, 3  ;;  %v1059_v43 = vld [vmem:[%s1403_s8] ss:$0 sm:$0xff] }
   0xf   : > { %s471_s25 = scalar_lea.vmem %s1395_s0, %s1039_s20  ;;  %s483_s30 = scalar_lea.vmem %s1409_s14, %s1041_s24  ;;  %v1063_v55 = vld [vmem:[%s1405_s10] ss:$0 sm:$0xff] }
  0x10   : > { %v1165_v4 = vld [vmem:[%s471_s25] sm:$0xff]  }
  0x11   : > { %1102 = vmatmul.mubr.msk.bf16.vlgmr.msra.gmra.mrb[0].mxu1 %vm516_vm1, %v1165_v4 }
  0x12   : > { %1106 = vmatpush3.bf16.msra.mxu1 %v1166_v3  ;;  %1113 = vmatprep.mubr.msk.bf16.mxu1 %vm1189_vm0, %v1188_v1 }
  0x13   : > { %1107 = vmatprep.subr.bf16.mxu1 %v1188_v1 }
  0x16   : > { %1108 = vmatpush3.bf16.msra.mxu1 %v1167_v5 }
  0x17   : > { %1109 = vmatprep.subr.bf16.mxu1 %v1188_v1 }
  0x1a   : > { %1110 = vmatpush3.bf16.msra.mxu1 %v1168_v6 }
  0x1b   : > { %1111 = vmatprep.subr.bf16.mxu1 %v1188_v1 }
  0x1e   : > { %1112 = vmatpush3.bf16.msra.mxu1 %v1169_v7 }
  0x1f   : > { %1133 = vmatprep.subr.bf16.mxu1 %v1188_v1 }
  0xe4   : > { %v554_v9 = vpop.f32.mrb[0].mxu1 }
  0xe5   : > { %v555_v10 = vadd.f32 %v1044_v8, %v554_v9  ;;  %v1103_v11 = vpop.f32.mrb[1].mxu1 }
  0xe6   : > { %v557_v12 = vpop.f32.mrb[2].mxu1 }
  0xe7   : > { %v558_v13 = vadd.f32 %v1044_v8, %v557_v12  ;;  %v1104_v14 = vpop.f32.mrb[3].mxu1  ;;  %v561_v15 = vmax.f32 %v555_v10, 0.0 }
  0xe9   : > { %v562_v16 = vmax.f32 %v558_v13, 0.0 }
  0xeb   : > { %v563_v17 = vpack.c.bf16 %v562_v16, %v561_v15 }
  0xed   : > { %1114 = vmatmul.mubr.msk.bf16.vlgmr.msra.gmra.mrb[4].mxu1 %vm603_vm2, %v563_v17 }
  0xee   : > { %1137 = vmatprep.mubr.msk.bf16.mxu1 %vm1189_vm0, %v1188_v1  ;;  %1134 = vmatpush3.bf16.msra.mxu1 %v1174_v32 }
  0xef   : > { %1135 = vmatprep.subr.bf16.mxu1 %v1188_v1 }
  0xf2   : > { %1136 = vmatpush3.bf16.msra.mxu1 %v1175_v33 }
 0x1c0   : > { %v641_v21 = vpop.f32.mrb[4].mxu1 }
 0x1c1   : > { %v642_v22 = vadd.f32 %v1049_v20, %v641_v21  ;;  %v1115_v23 = vpop.f32.mrb[5].mxu1 }
 0x1c2   : > { %v644_v24 = vpop.f32.mrb[6].mxu1 }
 0x1c3   : > { %v645_v25 = vadd.f32 %v1049_v20, %v644_v24  ;;  %v1116_v26 = vpop.f32.mrb[7].mxu1  ;;  %v648_v27 = vmax.f32 %v642_v22, 0.0 }
 0x1c5   : > { %v649_v28 = vmax.f32 %v645_v25, 0.0 }
 0x1c7   : > { %v650_v30 = vpack.c.bf16 %v649_v28, %v648_v27 }
 0x1c9   : > { %1122 = vmatmul.mubr.msk.bf16.vlgmr.msra.gmra.mrb[0].mxu0 %vm516_vm1, %v650_v30 }
 0x1ca   : > { %1126 = vmatpush3.bf16.msra.mxu0 %v1172_v29  ;;  %1129 = vmatprep.mubr.msk.bf16.mxu0 %vm1189_vm0, %v1188_v1 }
 0x1cb   : > { %1127 = vmatprep.subr.bf16.mxu0 %v1188_v1 }
 0x1ce   : > { %1128 = vmatpush3.bf16.msra.mxu0 %v1173_v31 }
 0x1cf   : > { %1141 = vmatprep.subr.bf16.mxu0 %v1188_v1 }
 0x1d1   : > { %1130 = vmatmul.mubr.msk.bf16.vlgmr.msra.gmra.mrb[4].mxu0 %vm516_vm1, %v650_v30 }
 0x1d2   : > { %1149 = vmatprep.mubr.msk.bf16.mxu0 %vm1189_vm0, %v1188_v1  ;;  %1142 = vmatpush3.bf16.msra.mxu0 %v1176_v34 }
 0x1d3   : > { %1143 = vmatprep.subr.bf16.mxu0 %v1188_v1 }
 0x1d6   : > { %1144 = vmatpush3.bf16.msra.mxu0 %v1177_v35 }
 0x1d7   : > { %1145 = vmatprep.subr.bf16.mxu0 %v1188_v1 }
 0x1da   : > { %1146 = vmatpush3.bf16.msra.mxu0 %v1178_v53 }
 0x1db   : > { %1147 = vmatprep.subr.bf16.mxu0 %v1188_v1  ;;  %v1067_v1 = vld [vmem:[%s1407_s12] ss:$0 sm:$0xff] }
 0x1de   : > { %1148 = vmatpush3.bf16.msra.mxu0 %v1179_v54 }
 0x29c   : > { %v711_v37 = vpop.f32.mrb[0].mxu0 }
 0x29d   : > { %v712_v38 = vadd.f32 %v1055_v36, %v711_v37  ;;  %v1123_v39 = vpop.f32.mrb[1].mxu0 }
 0x29e   : > { %v714_v40 = vpop.f32.mrb[2].mxu0 }
 0x29f   : > { %939 = vst.msk [vmem:[%s483_s30] sm:$0xff] %vm938_vm3, %v712_v38  ;;  %v715_v41 = vadd.f32 %v1055_v36, %v714_v40  ;;  %v1124_v42 = vpop.f32.mrb[3].mxu0 }
 0x2a1   : > { %940 = vst.msk [vmem:[%s483_s30 + $0x8] sm:$0xff] %vm938_vm3, %v715_v41  ;;  %s477_s30 = scalar_lea.vmem %s1408_s13, %s1041_s24 }
 0x2a4   : > { %v775_v44 = vpop.f32.mrb[4].mxu0 }
 0x2a5   : > { %v776_v45 = vadd.f32 %v1059_v43, %v775_v44  ;;  %v1131_v46 = vpop.f32.mrb[5].mxu0 }
 0x2a6   : > { %v778_v47 = vpop.f32.mrb[6].mxu0 }
 0x2a7   : > { %v779_v48 = vadd.f32 %v1059_v43, %v778_v47  ;;  %v1132_v49 = vpop.f32.mrb[7].mxu0  ;;  %v782_v50 = vmax.f32 %v776_v45, 0.0 }
 0x2a9   : > { %v783_v51 = vmax.f32 %v779_v48, 0.0 }
 0x2ab   : > { %v784_v52 = vpack.c.bf16 %v783_v51, %v782_v50 }
 0x2ad   : > { %1138 = vmatmul.mubr.msk.bf16.vlgmr.msra.gmra.mrb[8].mxu1 %vm516_vm1, %v784_v52 }
 0x380   : > { %v845_v56 = vpop.f32.mrb[8].mxu1 }
 0x381   : > { %v846_v57 = vadd.f32 %v1063_v55, %v845_v56  ;;  %v1139_v58 = vpop.f32.mrb[9].mxu1 }
 0x382   : > { %v848_v59 = vpop.f32.mrb[10].mxu1 }
 0x383   : > { %v849_v60 = vadd.f32 %v1063_v55, %v848_v59  ;;  %v1140_v61 = vpop.f32.mrb[11].mxu1  ;;  %v852_v62 = vmax.f32 %v846_v57, 0.0 }
 0x385   : > { %v853_v63 = vmax.f32 %v849_v60, 0.0 }
 0x387   : > { %v854_v0 = vpack.c.bf16 %v853_v63, %v852_v62 }
 0x389   : > { %1150 = vmatmul.mubr.msk.bf16.vlgmr.msra.gmra.mrb[8].mxu0 %vm603_vm2, %v854_v0 }
 0x45c   : > { %v931_v2 = vpop.f32.mrb[8].mxu0 }
 0x45d   : > { %v932_v3 = vadd.f32 %v1067_v1, %v931_v2  ;;  %v1151_v4 = vpop.f32.mrb[9].mxu0 }
 0x45e   : > { %v934_v5 = vpop.f32.mrb[10].mxu0 }
 0x45f   : > { %941 = vst.msk [vmem:[%s477_s30] sm:$0xff] %vm516_vm1, %v932_v3  ;;  %v935_v6 = vadd.f32 %v1067_v1, %v934_v5  ;;  %v1152_v7 = vpop.f32.mrb[11].mxu0 }
 0x461   : > { %942 = vst.msk [vmem:[%s477_s30 + $0x8] sm:$0xff] %vm516_vm1, %v935_v6 }
 0x462 PF: > { %s25_s29 = sadd.s32 1, %s1186_s29  }
 0x463   : > { %p22_p4 = scmp.ge.s32.totalorder %s25_s29, 5  }
 0x465   :  { %24 = sbr.rel (!%p22_p4) target bundleno = 1 (0x1), region = 114 }

</bundles_post_ra>
